<compile_context>
chip_gen: v6e
topology: v6e:2x2x1
jax: 0.10.0
libtpu: 0.0.40
codegen_flags: <defaults>
</compile_context>

<pallas_src>
import functools
import math

import jax
import jax.numpy as jnp
from jax import lax
from jax.experimental import pallas as pl
from jax.experimental.pallas import tpu as pltpu

_NEG_SENTINEL = -9000000000000000.0      # matches the PyTorch module


# ----------------------------- hardware sizing ----------------------------- #

@functools.lru_cache(maxsize=None)
def _tpu_vmem_capacity_bytes(default=64 * 1024 * 1024):
    """Physical VMEM per TensorCore; conservative 64 MiB if the query fails."""
    try:
        cap = int(pltpu.get_tpu_info().vmem_capacity_bytes)
        if cap > 0:
            return cap
    except Exception:
        pass
    return default


@functools.lru_cache(maxsize=None)
def _vmem_limit_bytes():
    """Scoped-VMEM request with headroom for compiler internal scratch:
    ~56 MiB on 64 MiB parts (v7x), ~112 MiB on 128 MiB parts (v5e/v6e)."""
    cap = _tpu_vmem_capacity_bytes()
    return min(cap * 7 // 8, cap - (8 << 20))


def _pick_tile(n, target, align=8):
    """Largest tile <= target that is a multiple of `align` and divides n,
    else the full extent n (full-extent blocks are always layout-legal).
    TODO(synk): for prime/awkward n this falls back to the full extent; pad n
    upstream if VMEM is a concern for very large T."""
    if n <= target:
        return n
    t = (target // align) * align
    while t >= align:
        if n % t == 0:
            return t
        t -= align
    return n


def _proj_row_tile(n_rows, d, w_cols, out_cols, x_bytes, out_bytes,
                   vmem_limit, target=512):
    """Budget-aware row tile for the QKV projection.  Per grid step the
    pipeline double-buffers the x tile and the three output tiles; the
    constant-index weight block is resident (2 buffers) for the whole call."""
    weight_bytes = 2 * d * w_cols * 4
    per_row = 2 * (d * x_bytes + out_cols * out_bytes)
    avail = max(int(vmem_limit * 0.6) - weight_bytes, per_row * 8)
    cap = max(8, (avail // per_row) // 8 * 8)
    return _pick_tile(n_rows, min(target, cap), align=8)


# ------------------------------ K/Q/V projection --------------------------- #

def _qkv_proj_fused_kernel(x_ref, w_ref, k_ref, q_ref, v_ref, *,
                           compute_dtype, attention_size):
    A = attention_size
    x = x_ref[...].astype(compute_dtype)                          # (bm, D)
    w = w_ref[...].astype(compute_dtype)                          # (D, 3A)
    y = jnp.dot(x, w, preferred_element_type=jnp.float32)         # (bm, 3A)
    # A % 128 == 0 here, so these are lane-aligned slices.
    k_ref[...] = y[:, 0 * A:1 * A].astype(k_ref.dtype)
    q_ref[...] = y[:, 1 * A:2 * A].astype(q_ref.dtype)
    v_ref[...] = y[:, 2 * A:3 * A].astype(v_ref.dtype)


def _qkv_proj_split_kernel(x_ref, wk_ref, wq_ref, wv_ref, k_ref, q_ref, v_ref,
                           *, compute_dtype):
    x = x_ref[...].astype(compute_dtype)                          # (bm, D)
    for w_ref, o_ref in ((wk_ref, k_ref), (wq_ref, q_ref), (wv_ref, v_ref)):
        y = jnp.dot(x, w_ref[...].astype(compute_dtype),
                    preferred_element_type=jnp.float32)           # (bm, A)
        o_ref[...] = y.astype(o_ref.dtype)


def _project_kqv(x, wk, wq, wv, compute_dtype):
    """K/Q/V = x @ W*, all batches fused into one row-blocked matmul.
    Outputs stored in compute_dtype (bf16 by default) for the flash kernel."""
    B, T, D = x.shape
    A = wk.shape[1]
    N = B * T
    x2 = x.reshape(N, D)
    vmem_limit = _vmem_limit_bytes()
    out_itemsize = jnp.dtype(compute_dtype).itemsize
    bm = _proj_row_tile(N, D, 3 * A, 3 * A, x2.dtype.itemsize, out_itemsize,
                        vmem_limit)

    o_spec = pl.BlockSpec((bm, A), lambda i: (i, 0))
    out_shape = tuple(jax.ShapeDtypeStruct((N, A), compute_dtype)
                      for _ in range(3))

    if A % 128 == 0:
        # Fused (D, 3A) weight: one MXU RHS push, fills the 256-wide MXU.
        w_cat = jnp.concatenate([wk, wq, wv], axis=1)             # (D, 3A)
        kernel = functools.partial(_qkv_proj_fused_kernel,
                                   compute_dtype=compute_dtype,
                                   attention_size=A)
        in_specs = [pl.BlockSpec((bm, D), lambda i: (i, 0)),
                    pl.BlockSpec((D, 3 * A), lambda i: (0, 0))]
        args = (x2, w_cat)
    else:
        # Fallback (A not lane-aligned): three separate weight streams.
        kernel = functools.partial(_qkv_proj_split_kernel,
                                   compute_dtype=compute_dtype)
        w_spec = pl.BlockSpec((D, A), lambda i: (0, 0))
        in_specs = [pl.BlockSpec((bm, D), lambda i: (i, 0)),
                    w_spec, w_spec, w_spec]
        args = (x2, wk, wq, wv)

    k2, q2, v2 = pl.pallas_call(
        kernel,
        out_shape=out_shape,
        grid_spec=pltpu.PrefetchScalarGridSpec(
            num_scalar_prefetch=0,
            grid=(N // bm,),
            in_specs=in_specs,
            out_specs=(o_spec, o_spec, o_spec),
        ),
        compiler_params=pltpu.CompilerParams(
            dimension_semantics=("parallel",),
            vmem_limit_bytes=vmem_limit),
    )(*args)
    return k2.reshape(B, T, A), q2.reshape(B, T, A), v2.reshape(B, T, A)


# --------------------------- flash attention core --------------------------- #

def _flash_attn_kernel(*refs, compute_dtype, has_mask, mask_batched):
    if has_mask:
        (kt_ref, qs_ref, vs_ref, mask_ref, wo_ref,
         o_ref, m_sc, l_sc, acc_sc) = refs
    else:
        (kt_ref, qs_ref, vs_ref, wo_ref,
         o_ref, m_sc, l_sc, acc_sc) = refs
        mask_ref = None

    j = pl.program_id(2)

    @pl.when(j == 0)
    def _init():
        m_sc[...] = jnp.full_like(m_sc, -jnp.inf)
        l_sc[...] = jnp.zeros_like(l_sc)
        acc_sc[...] = jnp.zeros_like(acc_sc)

    # NB: in this module the "query" rows (t) come from the K projection and
    # the softmax axis (s) runs over the Q projection -- logits = K @ Q^T.
    # The 1/sqrt(A) scale is pre-folded into Wq by the wrapper.
    kt = kt_ref[0].astype(compute_dtype)                          # (tq, A)
    qs = qs_ref[0].astype(compute_dtype)                          # (tk, A)
    # Contract the last axis of both operands: no explicit .T / XLU transpose.
    s = lax.dot_general(kt, qs, (((1,), (1,)), ((), ())),
                        preferred_element_type=jnp.float32)       # (tq, tk) f32

    if has_mask:
        # int8 0/1 mask, scalar sentinel (no full_like temporary); f32 math.
        m = mask_ref[0] if mask_batched else mask_ref[...]
        s = jnp.where(m > 0, s, _NEG_SENTINEL)

    m_prev = m_sc[...]
    m_new = jnp.maximum(m_prev, jnp.max(s, axis=-1, keepdims=True))
    alpha = jnp.exp(m_prev - m_new)
    p = jnp.exp(s - m_new)                                        # (tq, tk) f32
    l_sc[...] = alpha * l_sc[...] + jnp.sum(p, axis=-1, keepdims=True)
    acc_sc[...] = alpha * acc_sc[...] + jnp.dot(
        p.astype(compute_dtype), vs_ref[0].astype(compute_dtype),
        preferred_element_type=jnp.float32)
    m_sc[...] = m_new

    @pl.when(j == pl.num_programs(2) - 1)
    def _finalize():
        # Exact reciprocal in f32 mode; EUP approx is free + plenty for bf16.
        approx = jnp.dtype(compute_dtype) == jnp.dtype(jnp.bfloat16)
        inv_l = pl.reciprocal(l_sc[...], approx=approx)
        attn = acc_sc[...] * inv_l                                # (tq, A) f32
        out = jnp.dot(attn.astype(compute_dtype),
                      wo_ref[...].astype(compute_dtype),
                      preferred_element_type=jnp.float32)         # (tq, O)
        o_ref[0] = out.astype(o_ref.dtype)


def self_attention(x, wk, wq, wv, wo, att_mask=None, *,
                   compute_dtype=jnp.bfloat16, block_q=None, block_k=None):
    """x: (B,T,D). wk/wq/wv: (D,A), wo: (A,O) -- stored (in, out), y = x @ W.
    att_mask: (T,T), (1,T,T) or broadcastable to (B,T,T); entries > 0 kept.
    Dropout = identity (inference); get_pe=False so PE is unused."""
    # TODO(synk): nn.Dropout (train mode) and PositionalEncoding_old
    # (get_pe=True) are identity/unused in the default inference path.
    B, T, D = x.shape
    A = wk.shape[1]
    O = wo.shape[1]

    vmem_limit = _vmem_limit_bytes()
    big_vmem = _tpu_vmem_capacity_bytes() >= (100 << 20)   # v5e/v6e: 128 MiB
    if block_q is None:
        block_q = 512 if big_vmem else 256
    if block_k is None:
        block_k = 512 if big_vmem else 256

    # Fold the 1/sqrt(A) logit scale into Wq once (removes a per-step
    # (tq,tk) f32 multiply in the kv loop).
    wq_scaled = (wq.astype(jnp.float32) *
                 jnp.float32(1.0 / math.sqrt(A))).astype(wq.dtype)

    k_p, q_p, v_p = _project_kqv(x, wk, wq_scaled, wv, compute_dtype)

    has_mask = att_mask is not None
    # tk is the lane dim of the logits tile and MXU N/K dim -> align 128.
    # tq must be a multiple of 32 when the int8 mask is present (native tiling).
    tq = _pick_tile(T, block_q, align=32 if has_mask else 8)
    tk = _pick_tile(T, block_k, align=128)

    in_specs = [
        pl.BlockSpec((1, tq, A), lambda b, i, j: (b, i, 0)),   # K  (t rows)
        pl.BlockSpec((1, tk, A), lambda b, i, j: (b, j, 0)),   # Q  (s cols)
        pl.BlockSpec((1, tk, A), lambda b, i, j: (b, j, 0)),   # V
    ]
    args = [k_p, q_p, v_p]

    mask_batched = False
    if has_mask:
        am = jnp.asarray(att_mask)
        if am.ndim == 2:
            pass                                   # (T, T): shared across B
        elif am.ndim == 3 and am.shape[0] == 1:
            am = am[0]                             # (1, T, T) -> (T, T)
        else:
            am = jnp.broadcast_to(am, (B, T, T))   # genuinely per-batch mask
            mask_batched = True
        mask_i8 = (am > 0).astype(jnp.int8)
        if mask_batched:
            in_specs.append(pl.BlockSpec((1, tq, tk), lambda b, i, j: (b, i, j)))
        else:
            # No (B,T,T) materialization: index_map ignores b entirely.
            in_specs.append(pl.BlockSpec((tq, tk), lambda b, i, j: (i, j)))
        args.append(mask_i8)

    # Constant-index weight block (small here; hoist/pin for very large A*O).
    in_specs.append(pl.BlockSpec((A, O), lambda b, i, j: (0, 0)))
    args.append(wo)

    kernel = functools.partial(_flash_attn_kernel,
                               compute_dtype=compute_dtype,
                               has_mask=has_mask,
                               mask_batched=mask_batched)

    return pl.pallas_call(
        kernel,
        out_shape=jax.ShapeDtypeStruct((B, T, O), x.dtype),
        grid_spec=pltpu.PrefetchScalarGridSpec(
            num_scalar_prefetch=0,
            grid=(B, T // tq, T // tk),          # kv axis last (reduction)
            in_specs=in_specs,
            out_specs=pl.BlockSpec((1, tq, O), lambda b, i, j: (b, i, 0)),
            scratch_shapes=[
                pltpu.VMEM((tq, 1), jnp.float32),   # running max m
                pltpu.VMEM((tq, 1), jnp.float32),   # running denom l
                pltpu.VMEM((tq, A), jnp.float32),   # unnormalized acc
            ],
        ),
        compiler_params=pltpu.CompilerParams(
            dimension_semantics=("parallel", "parallel", "arbitrary"),
            vmem_limit_bytes=vmem_limit),
    )(*args)


# ------------------------------- reference --------------------------------- #

def _reference(x, wk, wq, wv, wo, att_mask=None):
    A = wk.shape[1]
    K = x @ wk
    Q = x @ wq
    V = x @ wv
    logits = jnp.einsum("bta,bsa->bts", K, Q) / jnp.float32(math.sqrt(A))
    if att_mask is not None:
        logits = jnp.where(att_mask > 0, logits, _NEG_SENTINEL)
    w = jax.nn.softmax(logits, axis=-1)
    attn = jnp.einsum("bts,bsa->bta", w, V)
    return attn @ wo


if __name__ == "__main__":
    def linear_w(k, fan_in, fan_out):
        # PyTorch nn.Linear default init U(-1/sqrt(in), 1/sqrt(in)),
        # stored as (in, out) = W^T so kernels do x @ W.
        bound = 1.0 / math.sqrt(fan_in)
        return jax.random.uniform(k, (fan_in, fan_out), jnp.float32,
                                  minval=-bound, maxval=bound)

    # --- Small shapes consistent with the module ---
    B, T = 2, 8
    input_size, attention_size, output_size = 32, 32, 32

    key = jax.random.PRNGKey(0)
    kx, kk, kq, kv, ko = jax.random.split(key, 5)
    x = jax.random.normal(kx, (B, T, input_size), dtype=jnp.float32)
    wk = linear_w(kk, input_size, attention_size)
    wq = linear_w(kq, input_size, attention_size)
    wv = linear_w(kv, input_size, attention_size)
    wo = linear_w(ko, attention_size, output_size)
    mask_b = jnp.tril(jnp.ones((B, T, T), dtype=jnp.float32))   # per-batch mask
    mask_s = jnp.tril(jnp.ones((T, T), dtype=jnp.float32))      # shared mask

    # f32 exact path, batched mask.
    out = jax.block_until_ready(
        self_attention(x, wk, wq, wv, wo, mask_b, compute_dtype=jnp.float32))
    ref = _reference(x, wk, wq, wv, wo, mask_b)
    assert out.shape == (B, T, output_size)
    assert jnp.allclose(out, ref, atol=1e-4, rtol=1e-4), "mismatch (f32 masked)"

    # Default bf16 MXU path, shared (T,T) mask (no batch broadcast).
    out_bf = jax.block_until_ready(self_attention(x, wk, wq, wv, wo, mask_s))
    assert jnp.allclose(out_bf, ref, atol=5e-2, rtol=5e-2), "mismatch (bf16)"

    # No-mask path (att_mask=None): mask-free variant, zero mask HBM traffic.
    out2 = jax.block_until_ready(
        self_attention(x, wk, wq, wv, wo, None, compute_dtype=jnp.float32))
    ref2 = _reference(x, wk, wq, wv, wo, None)
    assert jnp.allclose(out2, ref2, atol=1e-4, rtol=1e-4), "mismatch (no mask)"

    # --- Lane-dense shapes: fused (D,3A) projection + multi-tile softmax ---
    B2, T2, D2 = 2, 256, 128
    key2 = jax.random.PRNGKey(1)
    kx2, kk2, kq2, kv2, ko2 = jax.random.split(key2, 5)
    x2 = jax.random.normal(kx2, (B2, T2, D2), dtype=jnp.float32)
    wk2 = linear_w(kk2, D2, D2)
    wq2 = linear_w(kq2, D2, D2)
    wv2 = linear_w(kv2, D2, D2)
    wo2 = linear_w(ko2, D2, D2)
    mask2_s = jnp.tril(jnp.ones((T2, T2), dtype=jnp.float32))
    mask2_b = jnp.broadcast_to(mask2_s, (B2, T2, T2))
    ref3 = _reference(x2, wk2, wq2, wv2, wo2, mask2_s)

    # f32 exact path, shared mask, grid (2,2,2) online softmax.
    out3 = jax.block_until_ready(
        self_attention(x2, wk2, wq2, wv2, wo2, mask2_s,
                       compute_dtype=jnp.float32, block_q=128, block_k=128))
    assert jnp.allclose(out3, ref3, atol=2e-4, rtol=2e-4), "mismatch (tiled f32)"

    # Default bf16 MXU path, shared mask, tiled.
    out4 = jax.block_until_ready(
        self_attention(x2, wk2, wq2, wv2, wo2, mask2_s,
                       block_q=128, block_k=128))
    assert jnp.allclose(out4, ref3, atol=7e-2, rtol=7e-2), "mismatch (tiled bf16)"

    # Default (generation-derived) block sizes, genuinely batched mask.
    out5 = jax.block_until_ready(
        self_attention(x2, wk2, wq2, wv2, wo2, mask2_b))
    assert jnp.allclose(out5, ref3, atol=7e-2, rtol=7e-2), "mismatch (default blocks)"

    print("KERNEL_OK")
</pallas_src>

<mosaic_0001>
module attributes {stable_mosaic.version = 11 : i64} {
  func.func @_qkv_proj_split_kernel(%arg0: i32, %arg1: memref<16x32xf32, #tpu.memory_space<vmem>>, %arg2: memref<32x32xf32, #tpu.memory_space<vmem>>, %arg3: memref<32x32xf32, #tpu.memory_space<vmem>>, %arg4: memref<32x32xf32, #tpu.memory_space<vmem>>, %arg5: memref<16x32xf32, #tpu.memory_space<vmem>>, %arg6: memref<16x32xf32, #tpu.memory_space<vmem>>, %arg7: memref<16x32xf32, #tpu.memory_space<vmem>>) attributes {dimension_semantics = [#tpu.dimension_semantics<parallel>], iteration_bounds = array<i64: 1>, scalar_prefetch = 0 : i64, scratch_operands = 0 : i64, tpu.core_type = #tpu.core_type<tc>, window_params = [{transform_indices = @transform_0, window_bounds = array<i64: 16, 32>}, {pipeline_mode = #tpu.pipeline_mode<synchronous>, transform_indices = @transform_1, window_bounds = array<i64: 32, 32>}, {pipeline_mode = #tpu.pipeline_mode<synchronous>, transform_indices = @transform_2, window_bounds = array<i64: 32, 32>}, {pipeline_mode = #tpu.pipeline_mode<synchronous>, transform_indices = @transform_3, window_bounds = array<i64: 32, 32>}, {transform_indices = @transform_4, window_bounds = array<i64: 16, 32>}, {transform_indices = @transform_5, window_bounds = array<i64: 16, 32>}, {transform_indices = @transform_6, window_bounds = array<i64: 16, 32>}]} {
    %c0 = arith.constant 0 : index
    %c0_0 = arith.constant 0 : index
    %0 = vector.load %arg1[%c0, %c0_0] : memref<16x32xf32, #tpu.memory_space<vmem>>, vector<16x32xf32>
    %c0_1 = arith.constant 0 : index
    %c0_2 = arith.constant 0 : index
    %1 = vector.load %arg2[%c0_1, %c0_2] : memref<32x32xf32, #tpu.memory_space<vmem>>, vector<32x32xf32>
    %cst = arith.constant dense<0.000000e+00> : vector<16x32xf32>
    %2 = tpu.matmul %0, %1, %cst {dimension_numbers = #tpu.dot_dimension_numbers<[1], [0], [0], [1], [0, 0, 1, 1], [], []>} : vector<16x32xf32>, vector<32x32xf32>, vector<16x32xf32> -> vector<16x32xf32>
    %c0_3 = arith.constant 0 : index
    %c0_4 = arith.constant 0 : index
    %3 = vector.load %arg5[%c0_3, %c0_4] : memref<16x32xf32, #tpu.memory_space<vmem>>, vector<16x32xf32>
    tpu.vector_store %arg5[%c0_3, %c0_4], %2 {strides = array<i32>} : memref<16x32xf32, #tpu.memory_space<vmem>>, vector<16x32xf32>,
    %c0_5 = arith.constant 0 : index
    %c0_6 = arith.constant 0 : index
    %4 = vector.load %arg3[%c0_5, %c0_6] : memref<32x32xf32, #tpu.memory_space<vmem>>, vector<32x32xf32>
    %cst_7 = arith.constant dense<0.000000e+00> : vector<16x32xf32>
    %5 = tpu.matmul %0, %4, %cst_7 {dimension_numbers = #tpu.dot_dimension_numbers<[1], [0], [0], [1], [0, 0, 1, 1], [], []>} : vector<16x32xf32>, vector<32x32xf32>, vector<16x32xf32> -> vector<16x32xf32>
    %c0_8 = arith.constant 0 : index
    %c0_9 = arith.constant 0 : index
    %6 = vector.load %arg6[%c0_8, %c0_9] : memref<16x32xf32, #tpu.memory_space<vmem>>, vector<16x32xf32>
    tpu.vector_store %arg6[%c0_8, %c0_9], %5 {strides = array<i32>} : memref<16x32xf32, #tpu.memory_space<vmem>>, vector<16x32xf32>,
    %c0_10 = arith.constant 0 : index
    %c0_11 = arith.constant 0 : index
    %7 = vector.load %arg4[%c0_10, %c0_11] : memref<32x32xf32, #tpu.memory_space<vmem>>, vector<32x32xf32>
    %cst_12 = arith.constant dense<0.000000e+00> : vector<16x32xf32>
    %8 = tpu.matmul %0, %7, %cst_12 {dimension_numbers = #tpu.dot_dimension_numbers<[1], [0], [0], [1], [0, 0, 1, 1], [], []>} : vector<16x32xf32>, vector<32x32xf32>, vector<16x32xf32> -> vector<16x32xf32>
    %c0_13 = arith.constant 0 : index
    %c0_14 = arith.constant 0 : index
    %9 = vector.load %arg7[%c0_13, %c0_14] : memref<16x32xf32, #tpu.memory_space<vmem>>, vector<16x32xf32>
    tpu.vector_store %arg7[%c0_13, %c0_14], %8 {strides = array<i32>} : memref<16x32xf32, #tpu.memory_space<vmem>>, vector<16x32xf32>,
    return
  }
  func.func @transform_0(%arg0: i32) -> (i32, i32) {
    %c0_i32 = arith.constant 0 : i32
    %c0_i32_0 = arith.constant 0 : i32
    return %arg0, %c0_i32 : i32, i32
  }
  func.func @transform_1(%arg0: i32) -> (i32, i32) {
    %c0_i32 = arith.constant 0 : i32
    %c0_i32_0 = arith.constant 0 : i32
    %c0_i32_1 = arith.constant 0 : i32
    return %c0_i32, %c0_i32_0 : i32, i32
  }
  func.func @transform_2(%arg0: i32) -> (i32, i32) {
    %c0_i32 = arith.constant 0 : i32
    %c0_i32_0 = arith.constant 0 : i32
    %c0_i32_1 = arith.constant 0 : i32
    return %c0_i32, %c0_i32_0 : i32, i32
  }
  func.func @transform_3(%arg0: i32) -> (i32, i32) {
    %c0_i32 = arith.constant 0 : i32
    %c0_i32_0 = arith.constant 0 : i32
    %c0_i32_1 = arith.constant 0 : i32
    return %c0_i32, %c0_i32_0 : i32, i32
  }
  func.func @transform_4(%arg0: i32) -> (i32, i32) {
    %c0_i32 = arith.constant 0 : i32
    %c0_i32_0 = arith.constant 0 : i32
    return %arg0, %c0_i32 : i32, i32
  }
  func.func @transform_5(%arg0: i32) -> (i32, i32) {
    %c0_i32 = arith.constant 0 : i32
    %c0_i32_0 = arith.constant 0 : i32
    return %arg0, %c0_i32 : i32, i32
  }
  func.func @transform_6(%arg0: i32) -> (i32, i32) {
    %c0_i32 = arith.constant 0 : i32
    %c0_i32_0 = arith.constant 0 : i32
    return %arg0, %c0_i32 : i32, i32
  }
}

</mosaic_0001>

<bundles_post_ra>
// kernel: tpu_custom_call.1
= control target key start
LH: loop header
LB: loop body
LE: loop exit
PB: predicated region body
PF: predicated region fallthrough
CT: control target
= control target key end

     0   :  { %12 = vsyncpa [#allocation3], 0  ;;  %s693_s0 = inlined_call_operand.hbm [shape: f32[16,32], index: 0, kind: input, shape index: {}]   ;;  %s694_s1 = inlined_call_operand.hbm [shape: f32[32,32], index: 1, kind: input, shape index: {}]   ;;  %s695_s2 = inlined_call_operand.hbm [shape: f32[32,32], index: 2, kind: input, shape index: {}]   ;;  %s696_s3 = inlined_call_operand.hbm [shape: f32[32,32], index: 3, kind: input, shape index: {}]   ;;  %s697_s4 = inlined_call_operand.hbm [shape: f32[16,32], index: 4, kind: output, shape index: {0}]   ;;  %s698_s5 = inlined_call_operand.hbm [shape: f32[16,32], index: 5, kind: output, shape index: {1}]   ;;  %s699_s6 = inlined_call_operand.hbm [shape: f32[16,32], index: 6, kind: output, shape index: {2}]  }
   0x1   :  { %13 = vsyncpa [#allocation6], 0 }
   0x2   :  { %14 = vsyncpa [#allocation9], 0 }
   0x3   :  { %15 = vsyncpa [#allocation4], 0 }
   0x4   :  { %16 = vsyncpa [#allocation12], 0  ;;  %s595_s21 = smov [#allocation5]   ;;  %s596_s23 = smov [#allocation2]  }
   0x5   :  { %s34_s22 = sshll.u32 %s595_s21, 4  ;;  %s22_s24 = sshll.u32 %s596_s23, 4  ;;  %s35_s22 = int_to_ptr.vmem [resolvable:$true] %s34_s22  ;;  %s23_s24 = int_to_ptr.vmem [resolvable:$true] %s22_s24 }
   0x6   :  { %s453_s25 = scalar_lea.vmem %s35_s22, 512  ;;  %p458_p1 = scmp.lt.s32.totalorder %s35_s22, %s35_s22 }
   0x7   :  { %p454_p0 = scmp.ne.s32.totalorder %s35_s22, %s453_s25  ;;  %p459_p2 = scmp.lt.s32.totalorder %s453_s25, %s453_s25 }
   0x9   :  { %p460_p3 = por %p459_p2, %p458_p1 }
   0xb   :  { %p461_p4 = pnand %p460_p3, %p454_p0 }
   0xd   :  { %464 = shalt.err (!%p461_p4)
}
   0xe   :  { %s597_s26 = smov 128   ;;  %s598_s27 = smov 8  }
   0xf   :  { %40 = dma.hbm_to_vmem [thread:$0]  %s694_s1, 512, %s35_s22, [#allocation6], %s597_s26, %s597_s26, %s598_s27  }
  0x10   :  { %s473_s30 = scalar_lea.vmem %s23_s24, 256  ;;  %p478_p6 = scmp.lt.s32.totalorder %s23_s24, %s23_s24 }
  0x11   :  { %p474_p5 = scmp.ne.s32.totalorder %s23_s24, %s473_s30  ;;  %p479_p7 = scmp.lt.s32.totalorder %s473_s30, %s473_s30 }
  0x13   :  { %p480_p8 = por %p479_p7, %p478_p6 }
  0x15   :  { %p481_p9 = pnand %p480_p8, %p474_p5 }
  0x17   :  { %484 = shalt.err (!%p481_p9)
}
  0x18   :  { %28 = dma.hbm_to_vmem [thread:$0]  %s693_s0, 256, %s23_s24, [#allocation3], %s597_s26, %s597_s26, %s598_s27  }
  0x19   :  { %s599_s9 = smov [#allocation7]   ;;  %s600_s11 = smov [#allocation8]  }
  0x1a   :  { %s46_s10 = sshll.u32 %s599_s9, 4  ;;  %s58_s12 = sshll.u32 %s600_s11, 4  ;;  %s47_s10 = int_to_ptr.vmem [resolvable:$true] %s46_s10  ;;  %s59_s12 = int_to_ptr.vmem [resolvable:$true] %s58_s12 }
  0x1b   :  { %s493_s1 = scalar_lea.vmem %s47_s10, 512  ;;  %p498_p11 = scmp.lt.s32.totalorder %s47_s10, %s47_s10 }
  0x1c   :  { %p494_p10 = scmp.ne.s32.totalorder %s47_s10, %s493_s1  ;;  %p499_p12 = scmp.lt.s32.totalorder %s493_s1, %s493_s1 }
  0x1e   :  { %p500_p13 = por %p499_p12, %p498_p11 }
  0x20   :  { %p501_p0 = pnand %p500_p13, %p494_p10 }
  0x22   :  { %504 = shalt.err (!%p501_p0)
}
  0x23   :  { %52 = dma.hbm_to_vmem [thread:$0]  %s695_s2, 512, %s47_s10, [#allocation6], %s597_s26, %s597_s26, %s598_s27  }
  0x24   :  { %s513_s0 = scalar_lea.vmem %s59_s12, 512  ;;  %p518_p2 = scmp.lt.s32.totalorder %s59_s12, %s59_s12 }
  0x25   :  { %p514_p1 = scmp.ne.s32.totalorder %s59_s12, %s513_s0  ;;  %p519_p3 = scmp.lt.s32.totalorder %s513_s0, %s513_s0 }
  0x27   :  { %p520_p4 = por %p519_p3, %p518_p2 }
  0x29   :  { %p521_p5 = pnand %p520_p4, %p514_p1 }
  0x2b   :  { %524 = shalt.err (!%p521_p5)
}
  0x2c   :  { %64 = dma.hbm_to_vmem [thread:$0]  %s696_s3, 512, %s59_s12, [#allocation9], %s597_s26, %s597_s26, %s598_s27  }
  0x2d   :  { %585 = dma.done.wait [#allocation3], 256  }
  0x2e   :  { %586 = vsyncadd [#allocation3], 4294967040 }
  0x2f   :  { %587 = dma.done.wait [#allocation6], 1024  }
  0x30   :  { %588 = vsyncadd [#allocation6], 4294966272 }
  0x31   :  { %589 = dma.done.wait [#allocation9], 512  }
  0x32   :  { %590 = vsyncadd [#allocation9], 4294966784  ;;  %v82_v0 = vld [vmem:[#allocation5 + $0x18] sm:$0xff]  ;;  %v81_v1 = vld [vmem:[#allocation5 + $0x10] sm:$0xff]  ;;  %vm83_vm0 = vcmask 261120   ;;  %s601_s2 = smov [#allocation10]  }
  0x33   :  { %403 = vmatprep.subr.mxu0 %v82_v0  ;;  %v170_v2 = vld [vmem:[#allocation7 + $0x18] sm:$0xff]  ;;  %v77_v3 = vld [vmem:[#allocation2] sm:$0xff]  ;;  %v80_v4 = vld [vmem:[#allocation5 + $0x8] sm:$0xff]  ;;  %s334_s3 = sshll.u32 %s601_s2, 4  ;;  %s602_s17 = smov [#allocation11]   ;;  %s335_s3 = int_to_ptr.vmem [resolvable:$true] %s334_s3 }
  0x34   :  { %404 = vmatpush3.msra.mxu0 %v82_v0  ;;  %414 = vmatprep.subr.mxu1 %v170_v2  ;;  %v169_v5 = vld [vmem:[#allocation7 + $0x10] sm:$0xff]  ;;  %v79_v6 = vld [vmem:[#allocation5] sm:$0xff]  ;;  %v168_v7 = vld [vmem:[#allocation7 + $0x8] sm:$0xff]  ;;  %s346_s18 = sshll.u32 %s602_s17, 4  ;;  %s525_s19 = scalar_lea.vmem %s335_s3, 256  ;;  %s347_s18 = int_to_ptr.vmem [resolvable:$true] %s346_s18 }
  0x35   :  { %405 = vmatprep.subr.mxu0 %v81_v1  ;;  %415 = vmatpush3.msra.mxu1 %v170_v2  ;;  %v78_v8 = vld [vmem:[#allocation2 + $0x8] sm:$0xff]  ;;  %v167_v10 = vld [vmem:[#allocation7] sm:$0xff]  ;;  %v250_v11 = vld [vmem:[#allocation8 + $0x10] sm:$0xff]  ;;  %p526_p6 = scmp.ne.s32.totalorder %s335_s3, %s525_s19  ;;  %p530_p7 = scmp.lt.s32.totalorder %s335_s3, %s335_s3 }
  0x36   :  { %406 = vmatpush3.msra.mxu0 %v81_v1  ;;  %411 = vmatprep.mubr.msk.f32.mxu0 %vm83_vm0, %v77_v3  ;;  %v251_v9 = vld [vmem:[#allocation8 + $0x18] sm:$0xff]  ;;  %v249_v12 = vld [vmem:[#allocation8 + $0x8] sm:$0xff]  ;;  %v248_v13 = vld [vmem:[#allocation8] sm:$0xff]  ;;  %p531_p8 = scmp.lt.s32.totalorder %s525_s19, %s525_s19 }
  0x37   :  { %407 = vmatprep.subr.mxu0 %v80_v4  ;;  %416 = vmatprep.subr.mxu1 %v169_v5 }
  0x38   :  { %408 = vmatpush3.msra.mxu0 %v80_v4  ;;  %417 = vmatpush3.msra.mxu1 %v169_v5  ;;  %p532_p9 = por %p531_p8, %p530_p7 }
  0x39   :  { %409 = vmatprep.subr.mxu0 %v79_v6  ;;  %418 = vmatprep.subr.mxu1 %v168_v7 }
  0x3a   :  { %410 = vmatpush3.msra.mxu0 %v79_v6  ;;  %419 = vmatpush3.msra.mxu1 %v168_v7  ;;  %p533_p10 = pnand %p532_p9, %p526_p6 }
  0x3b   :  { %412 = vmatmul.mubr.msk.f32.vlgmr.msra.gmra.mxu0 %vm83_vm0, %v78_v8  ;;  %425 = vmatprep.subr.mxu0 %v251_v9 }
  0x3c   :  { %426 = vmatpush3.msra.mxu0 %v251_v9  ;;  %420 = vmatprep.subr.mxu1 %v167_v10 }
  0x3d   :  { %427 = vmatprep.subr.mxu0 %v250_v11  ;;  %421 = vmatpush3.msra.mxu1 %v167_v10 }
  0x3e   :  { %428 = vmatpush3.msra.mxu0 %v250_v11  ;;  %422 = vmatprep.mubr.msk.f32.mxu1 %vm83_vm0, %v77_v3 }
  0x3f   :  { %429 = vmatprep.subr.mxu0 %v249_v12  ;;  %423 = vmatmul.mubr.msk.f32.vlgmr.msra.gmra.mxu1 %vm83_vm0, %v78_v8 }
  0x40   :  { %430 = vmatpush3.msra.mxu0 %v249_v12  ;;  %433 = vmatprep.mubr.msk.f32.mxu0 %vm83_vm0, %v77_v3 }
  0x41   :  { %431 = vmatprep.subr.mxu0 %v248_v13 }
  0x42   :  { %432 = vmatpush3.msra.mxu0 %v248_v13 }
  0x43   :  { %434 = vmatmul.mubr.msk.f32.vlgmr.msra.gmra.mxu0 %vm83_vm0, %v78_v8 }
  0xfb   :  { %v413_v14 = vpop.f32.mrf.mxu0 }
  0xfc   :  { %166 = vst.msk [vmem:[#allocation10 + $0x8] sm:$0xff] %vm83_vm0, %v413_v14 }
  0xfd   :  { %v156_v15 = vpop.f32.mrf.mxu0 }
  0xfe   :  { %165 = vst.msk [vmem:[#allocation10] sm:$0xff] %vm83_vm0, %v156_v15 }
  0xff   :  { %v424_v16 = vpop.f32.mrf.mxu1 }
 0x100   :  { %536 = shalt.err (!%p533_p10)
}
 0x101   :  { %340 = dma.vmem_to_hbm [thread:$0]  %s335_s3, 256, %s697_s4, [#allocation4], %s597_s26, %s597_s26, %s598_s27   ;;  %247 = vst.msk [vmem:[#allocation11 + $0x8] sm:$0xff] %vm83_vm0, %v424_v16  ;;  %v237_v17 = vpop.f32.mrf.mxu1 }
 0x102   :  { %s603_s22 = smov [#allocation13]   ;;  %246 = vst.msk [vmem:[#allocation11] sm:$0xff] %vm83_vm0, %v237_v17  ;;  %s545_s24 = scalar_lea.vmem %s347_s18, 256 }
 0x103   :  { %s358_s23 = sshll.u32 %s603_s22, 4  ;;  %v435_v18 = vpop.f32.mrf.mxu0  ;;  %p546_p11 = scmp.ne.s32.totalorder %s347_s18, %s545_s24  ;;  %s359_s23 = int_to_ptr.vmem [resolvable:$true] %s358_s23 }
 0x104   :  { %p550_p12 = scmp.lt.s32.totalorder %s347_s18, %s347_s18  ;;  %p551_p13 = scmp.lt.s32.totalorder %s545_s24, %s545_s24 }
 0x106   :  { %p552_p0 = por %p551_p13, %p550_p12 }
 0x108   :  { %p553_p1 = pnand %p552_p0, %p546_p11 }
 0x10a   :  { %556 = shalt.err (!%p553_p1)
}
 0x10b   :  { %352 = dma.vmem_to_hbm [thread:$0]  %s347_s18, 256, %s698_s5, [#allocation12], %s597_s26, %s597_s26, %s598_s27   ;;  %328 = vst.msk [vmem:[#allocation13 + $0x8] sm:$0xff] %vm83_vm0, %v435_v18  ;;  %v318_v19 = vpop.f32.mrf.mxu0 }
 0x10c   :  { %327 = vst.msk [vmem:[#allocation13] sm:$0xff] %vm83_vm0, %v318_v19  ;;  %s565_s28 = scalar_lea.vmem %s359_s23, 256  ;;  %p570_p3 = scmp.lt.s32.totalorder %s359_s23, %s359_s23 }
 0x10d   :  { %p566_p2 = scmp.ne.s32.totalorder %s359_s23, %s565_s28  ;;  %p571_p4 = scmp.lt.s32.totalorder %s565_s28, %s565_s28 }
 0x10f   :  { %p572_p5 = por %p571_p4, %p570_p3 }
 0x111   :  { %p573_p6 = pnand %p572_p5, %p566_p2 }
 0x113   :  { %576 = shalt.err (!%p573_p6)
}
 0x114   :  { %364 = dma.vmem_to_hbm [thread:$0]  %s359_s23, 256, %s699_s6, [#allocation12], %s597_s26, %s597_s26, %s598_s27  }
 0x115   :  { %591 = dma.done.wait [#allocation4], 256  }
 0x116   :  { %592 = vsyncadd [#allocation4], 4294967040 }
 0x117   :  { %593 = dma.done.wait [#allocation12], 512  }
 0x118   :  { %594 = vsyncadd [#allocation12], 4294966784 }
 0x119   :  { %374 = vsyncpa [#allocation3], 1 }
 0x11a   :  { %375 = vsyncpa [#allocation6], 1 }
 0x11b   :  { %376 = vsyncpa [#allocation9], 1 }
 0x11c   :  { %377 = vsyncpa [#allocation4], 1 }
 0x11d   :  { %378 = vsyncpa [#allocation12], 1 }

</bundles_post_ra>
